<compile_context>
chip_gen: v5e
topology: v5e:2x2
jax: 0.10.0
libtpu: 0.0.40
codegen_flags: <defaults>
</compile_context>

<pallas_src>
import jax
import jax.numpy as jnp
from jax.experimental import pallas as pl
from jax.experimental.pallas import tpu as pltpu

BN_EPS = 1e-5
LANE = 128
SUBLANE = 8
MAX_TK = 512              # K tile of the first matmul (rows of W1)
MAX_TN = 256              # N tile of the last matmuls (cols of W3 / CW2 / out)
VMEM_LIMIT_BYTES = 48 * 1024 * 1024   # fits v7x (64 MiB phys) with headroom


def _round_up(n, m):
    return (n + m - 1) // m * m


def _pick_tile(dim_pad, max_tile):
    """Largest multiple of LANE that divides dim_pad and is <= max_tile."""
    t = min(dim_pad, max_tile)
    while dim_pad % t:
        t -= LANE
    return t


def _silu(h):
    return h * jax.nn.sigmoid(h)


# --------------------------------------------------------------------------
# Stage 1: x -> h2 (bottleneck activations), cond -> c1 (cond hidden)
# Grid over K tiles of F; f32 accumulator in VMEM scratch.
# --------------------------------------------------------------------------
def _stage1_kernel(x_ref, w1_ref, b1_ref, w2_ref, b2_ref,
                   cond_ref, cw1_ref, cb1_ref,
                   h2_ref, c1_ref, acc_ref):
    k = pl.program_id(0)

    @pl.when(k == 0)
    def _():
        acc_ref[...] = jnp.zeros_like(acc_ref)

    acc_ref[...] += jnp.dot(x_ref[...], w1_ref[...],
                            preferred_element_type=jnp.float32)

    @pl.when(k == pl.num_programs(0) - 1)
    def _():
        # BN1 already folded into w1/b1; Dropout is identity in eval mode.
        h1 = _silu(acc_ref[...] + b1_ref[...]).astype(w2_ref.dtype)
        h2 = _silu(jnp.dot(h1, w2_ref[...],
                           preferred_element_type=jnp.float32) + b2_ref[...])
        c1 = _silu(jnp.dot(cond_ref[...], cw1_ref[...],
                           preferred_element_type=jnp.float32) + cb1_ref[...])
        h2_ref[...] = h2.astype(h2_ref.dtype)
        c1_ref[...] = c1.astype(c1_ref.dtype)


# --------------------------------------------------------------------------
# Stage 2: out[:, n] = h2 @ W3[:, n] + c1 @ CW2[:, n] + bias[n]
# Grid over N tiles of F, marked "parallel" (v7x megacore).
# --------------------------------------------------------------------------
def _stage2_kernel(h2_ref, c1_ref, w3_ref, cw2_ref, bias_ref, out_ref):
    acc = jnp.dot(h2_ref[...], w3_ref[...], preferred_element_type=jnp.float32)
    acc += jnp.dot(c1_ref[...], cw2_ref[...], preferred_element_type=jnp.float32)
    out_ref[...] = (acc + bias_ref[...]).astype(out_ref.dtype)


# --------------------------------------------------------------------------
# Wrapper
# --------------------------------------------------------------------------
def dense_bottleneck(x, cond, p):
    """x: (B, C, L) f32, cond: (B, Dc) f32 -> (B, C, L) f32."""
    B, C, L = x.shape
    F = C * L
    assert F == p["F"]
    F_pad, H_pad, H2_pad, Dc_pad = p["F_pad"], p["H_pad"], p["H2_pad"], p["Dc_pad"]
    B_pad = _round_up(B, SUBLANE)

    x_flat = x.reshape(B, F)
    x_p = jnp.pad(x_flat, ((0, B_pad - B), (0, F_pad - F))).astype(jnp.bfloat16)
    cond_p = jnp.pad(cond, ((0, B_pad - B),
                            (0, Dc_pad - cond.shape[1]))).astype(jnp.bfloat16)

    tk = _pick_tile(F_pad, MAX_TK)
    tn = _pick_tile(F_pad, MAX_TN)
    num_k = F_pad // tk
    num_n = F_pad // tn

    # ---- Stage 1: K-tiled first matmul + small second matmul + cond MLP ----
    h2_p, c1_p = pl.pallas_call(
        _stage1_kernel,
        out_shape=(jax.ShapeDtypeStruct((B_pad, H_pad), jnp.bfloat16),
                   jax.ShapeDtypeStruct((B_pad, H_pad), jnp.bfloat16)),
        grid=(num_k,),
        in_specs=[
            pl.BlockSpec((B_pad, tk), lambda k: (0, k)),        # x tile
            pl.BlockSpec((tk, H2_pad), lambda k: (k, 0)),       # W1 tile
            pl.BlockSpec((1, H2_pad), lambda k: (0, 0)),        # b1 (folded BN1)
            pl.BlockSpec((H2_pad, H_pad), lambda k: (0, 0)),    # W2 (folded BN2)
            pl.BlockSpec((1, H_pad), lambda k: (0, 0)),         # b2
            pl.BlockSpec((B_pad, Dc_pad), lambda k: (0, 0)),    # cond
            pl.BlockSpec((Dc_pad, H_pad), lambda k: (0, 0)),    # CW1
            pl.BlockSpec((1, H_pad), lambda k: (0, 0)),         # cb1
        ],
        out_specs=(pl.BlockSpec((B_pad, H_pad), lambda k: (0, 0)),
                   pl.BlockSpec((B_pad, H_pad), lambda k: (0, 0))),
        scratch_shapes=[pltpu.VMEM((B_pad, H2_pad), jnp.float32)],
        compiler_params=pltpu.CompilerParams(
            dimension_semantics=("arbitrary",),
            vmem_limit_bytes=VMEM_LIMIT_BYTES),
    )(x_p, p["w1"], p["b1"], p["w2"], p["b2"], cond_p, p["cw1"], p["cb1"])

    # ---- Stage 2: N-tiled epilogue, weight-streaming, parallel over tiles ----
    out_p = pl.pallas_call(
        _stage2_kernel,
        out_shape=jax.ShapeDtypeStruct((B_pad, F_pad), jnp.float32),
        grid=(num_n,),
        in_specs=[
            pl.BlockSpec((B_pad, H_pad), lambda n: (0, 0)),     # h2
            pl.BlockSpec((B_pad, H_pad), lambda n: (0, 0)),     # c1
            pl.BlockSpec((H_pad, tn), lambda n: (0, n)),        # W3 tile
            pl.BlockSpec((H_pad, tn), lambda n: (0, n)),        # CW2 tile
            pl.BlockSpec((1, tn), lambda n: (0, n)),            # b3 + cb2 tile
        ],
        out_specs=pl.BlockSpec((B_pad, tn), lambda n: (0, n)),
        compiler_params=pltpu.CompilerParams(
            dimension_semantics=("parallel",),
            vmem_limit_bytes=VMEM_LIMIT_BYTES),
    )(h2_p, c1_p, p["w3"], p["cw2"], p["bias_out"])

    return out_p[:B, :F].reshape(B, C, L)


# --------------------------------------------------------------------------
# Parameters
# --------------------------------------------------------------------------
def init_raw_params(key, in_channels, hidden_dim, cond_dim, signal_length):
    """PyTorch-layout f32 parameters: Linear weight (out, in), bias (out,),
    BatchNorm1d gamma/beta/running_mean/running_var."""
    F = in_channels * signal_length
    H = hidden_dim
    H2 = 2 * hidden_dim
    Dc = cond_dim
    ks = jax.random.split(key, 18)
    s = 0.05
    return dict(
        w1=s * jax.random.normal(ks[0], (H2, F), jnp.float32),
        b1=s * jax.random.normal(ks[1], (H2,), jnp.float32),
        bn1_gamma=1.0 + 0.1 * jax.random.normal(ks[2], (H2,), jnp.float32),
        bn1_beta=0.1 * jax.random.normal(ks[3], (H2,), jnp.float32),
        bn1_mean=0.1 * jax.random.normal(ks[4], (H2,), jnp.float32),
        bn1_var=jax.random.uniform(ks[5], (H2,), jnp.float32, 0.5, 1.5),
        w2=s * jax.random.normal(ks[6], (H, H2), jnp.float32),
        b2=s * jax.random.normal(ks[7], (H,), jnp.float32),
        bn2_gamma=1.0 + 0.1 * jax.random.normal(ks[8], (H,), jnp.float32),
        bn2_beta=0.1 * jax.random.normal(ks[9], (H,), jnp.float32),
        bn2_mean=0.1 * jax.random.normal(ks[10], (H,), jnp.float32),
        bn2_var=jax.random.uniform(ks[11], (H,), jnp.float32, 0.5, 1.5),
        w3=s * jax.random.normal(ks[12], (F, H), jnp.float32),
        b3=s * jax.random.normal(ks[13], (F,), jnp.float32),
        cw1=s * jax.random.normal(ks[14], (H, Dc), jnp.float32),
        cb1=s * jax.random.normal(ks[15], (H,), jnp.float32),
        cw2=s * jax.random.normal(ks[16], (F, H), jnp.float32),
        cb2=s * jax.random.normal(ks[17], (F,), jnp.float32),
    )


def prepare_params(raw, in_channels, hidden_dim, cond_dim, signal_length):
    """One-time transform: fold eval-mode BN into W/b, transpose to (in, out),
    merge b3 + cb2, pad to lane/sublane-dense shapes, cast weights to bf16."""
    F = in_channels * signal_length
    H = hidden_dim
    H2 = 2 * hidden_dim
    Dc = cond_dim

    F_pad = _round_up(F, LANE)
    if F_pad > MAX_TK:                       # keep K-tile grid evenly divisible
        F_pad = _round_up(F_pad, MAX_TK)
    H_pad = _round_up(H, LANE)
    H2_pad = _round_up(H2, LANE)
    Dc_pad = _round_up(Dc, LANE)

    # Fold BatchNorm (running stats, eval mode) into preceding Linear.
    s1 = raw["bn1_gamma"] / jnp.sqrt(raw["bn1_var"] + BN_EPS)
    w1 = raw["w1"].T * s1[None, :]                       # (F, H2)
    b1 = s1 * (raw["b1"] - raw["bn1_mean"]) + raw["bn1_beta"]

    s2 = raw["bn2_gamma"] / jnp.sqrt(raw["bn2_var"] + BN_EPS)
    w2 = raw["w2"].T * s2[None, :]                       # (H2, H)
    b2 = s2 * (raw["b2"] - raw["bn2_mean"]) + raw["bn2_beta"]

    w3 = raw["w3"].T                                     # (H, F)
    cw1 = raw["cw1"].T                                   # (Dc, H)
    cw2 = raw["cw2"].T                                   # (H, F)
    bias_out = raw["b3"] + raw["cb2"]                    # merged output bias

    def pad2(a, r, c):
        return jnp.pad(a, ((0, r - a.shape[0]), (0, c - a.shape[1])))

    return dict(
        w1=pad2(w1, F_pad, H2_pad).astype(jnp.bfloat16),
        b1=pad2(b1[None, :], 1, H2_pad),                 # biases stay f32
        w2=pad2(w2, H2_pad, H_pad).astype(jnp.bfloat16),
        b2=pad2(b2[None, :], 1, H_pad),
        w3=pad2(w3, H_pad, F_pad).astype(jnp.bfloat16),
        cw1=pad2(cw1, Dc_pad, H_pad).astype(jnp.bfloat16),
        cb1=pad2(raw["cb1"][None, :], 1, H_pad),
        cw2=pad2(cw2, H_pad, F_pad).astype(jnp.bfloat16),
        bias_out=pad2(bias_out[None, :], 1, F_pad),
        F=F, F_pad=F_pad, H_pad=H_pad, H2_pad=H2_pad, Dc_pad=Dc_pad,
    )


# --------------------------------------------------------------------------
# Pure-JAX f32 reference of the eval-mode PyTorch forward (un-folded params)
# --------------------------------------------------------------------------
def reference(x, cond, raw):
    B, C, L = x.shape
    xf = x.reshape(B, C * L)

    def bn(h, g, b, m, v):
        return g * (h - m) / jnp.sqrt(v + BN_EPS) + b

    h1 = _silu(bn(xf @ raw["w1"].T + raw["b1"],
                  raw["bn1_gamma"], raw["bn1_beta"], raw["bn1_mean"], raw["bn1_var"]))
    h2 = _silu(bn(h1 @ raw["w2"].T + raw["b2"],
                  raw["bn2_gamma"], raw["bn2_beta"], raw["bn2_mean"], raw["bn2_var"]))
    bo = h2 @ raw["w3"].T + raw["b3"]
    c1 = _silu(cond @ raw["cw1"].T + raw["cb1"])
    c2 = c1 @ raw["cw2"].T + raw["cb2"]
    return (bo + c2).reshape(B, C, L)


if __name__ == "__main__":
    # Small shapes consistent with the module's forward:
    B, C, L = 2, 4, 16           # batch, in_channels, signal_length
    H, Dc = 32, 8                # hidden_dim, cond_dim

    key = jax.random.PRNGKey(0)
    kx, kc, kp = jax.random.split(key, 3)

    x = jax.random.normal(kx, (B, C, L), jnp.float32)
    cond = jax.random.normal(kc, (B, Dc), jnp.float32)

    raw = init_raw_params(kp, C, H, Dc, L)
    params = prepare_params(raw, C, H, Dc, L)

    out = dense_bottleneck(x, cond, params)
    out = jax.block_until_ready(out)

    ref = reference(x, cond, raw)
    assert out.shape == (B, C, L)
    max_err = float(jnp.max(jnp.abs(out - ref)))
    assert jnp.allclose(out, ref, atol=2e-2, rtol=2e-2), f"max abs err = {max_err}"

    print("KERNEL_OK")
</pallas_src>

<mosaic_0001>
module attributes {stable_mosaic.version = 11 : i64} {
  func.func @_stage1_kernel(%arg0: i32, %arg1: memref<8x128xbf16, #tpu.memory_space<vmem>>, %arg2: memref<128x128xbf16, #tpu.memory_space<vmem>>, %arg3: memref<1x128xf32, #tpu.memory_space<vmem>>, %arg4: memref<128x128xbf16, #tpu.memory_space<vmem>>, %arg5: memref<1x128xf32, #tpu.memory_space<vmem>>, %arg6: memref<8x128xbf16, #tpu.memory_space<vmem>>, %arg7: memref<128x128xbf16, #tpu.memory_space<vmem>>, %arg8: memref<1x128xf32, #tpu.memory_space<vmem>>, %arg9: memref<8x128xbf16, #tpu.memory_space<vmem>>, %arg10: memref<8x128xbf16, #tpu.memory_space<vmem>>, %arg11: memref<8x128xf32, #tpu.memory_space<vmem>>) attributes {dimension_semantics = [#tpu.dimension_semantics<arbitrary>], iteration_bounds = array<i64: 1>, scalar_prefetch = 0 : i64, scratch_operands = 1 : i64, tpu.core_type = #tpu.core_type<tc>, window_params = [{transform_indices = @transform_0, window_bounds = array<i64: 8, 128>}, {transform_indices = @transform_1, window_bounds = array<i64: 128, 128>}, {pipeline_mode = #tpu.pipeline_mode<synchronous>, transform_indices = @transform_2, window_bounds = array<i64: 1, 128>}, {pipeline_mode = #tpu.pipeline_mode<synchronous>, transform_indices = @transform_3, window_bounds = array<i64: 128, 128>}, {pipeline_mode = #tpu.pipeline_mode<synchronous>, transform_indices = @transform_4, window_bounds = array<i64: 1, 128>}, {pipeline_mode = #tpu.pipeline_mode<synchronous>, transform_indices = @transform_5, window_bounds = array<i64: 8, 128>}, {pipeline_mode = #tpu.pipeline_mode<synchronous>, transform_indices = @transform_6, window_bounds = array<i64: 128, 128>}, {pipeline_mode = #tpu.pipeline_mode<synchronous>, transform_indices = @transform_7, window_bounds = array<i64: 1, 128>}, {pipeline_mode = #tpu.pipeline_mode<synchronous>, transform_indices = @transform_8, window_bounds = array<i64: 8, 128>}, {pipeline_mode = #tpu.pipeline_mode<synchronous>, transform_indices = @transform_9, window_bounds = array<i64: 8, 128>}]} {
    %c0_i32 = arith.constant 0 : i32
    %0 = arith.cmpi eq, %arg0, %c0_i32 : i32
    %1 = arith.extui %0 : i1 to i32
    %c0_i32_0 = arith.constant 0 : i32
    %2 = arith.cmpi ne, %1, %c0_i32_0 : i32
    scf.if %2 {
      %cst_10 = arith.constant 0.000000e+00 : f32
      %12 = vector.broadcast %cst_10 : f32 to vector<8x128xf32>
      %c0_11 = arith.constant 0 : index
      %c0_12 = arith.constant 0 : index
      %13 = vector.load %arg11[%c0_11, %c0_12] : memref<8x128xf32, #tpu.memory_space<vmem>>, vector<8x128xf32>
      tpu.vector_store %arg11[%c0_11, %c0_12], %12 {strides = array<i32>} : memref<8x128xf32, #tpu.memory_space<vmem>>, vector<8x128xf32>,
    } else {
    }
    %c0 = arith.constant 0 : index
    %c0_1 = arith.constant 0 : index
    %3 = vector.load %arg11[%c0, %c0_1] : memref<8x128xf32, #tpu.memory_space<vmem>>, vector<8x128xf32>
    %c0_2 = arith.constant 0 : index
    %c0_3 = arith.constant 0 : index
    %4 = vector.load %arg1[%c0_2, %c0_3] : memref<8x128xbf16, #tpu.memory_space<vmem>>, vector<8x128xbf16>
    %c0_4 = arith.constant 0 : index
    %c0_5 = arith.constant 0 : index
    %5 = vector.load %arg2[%c0_4, %c0_5] : memref<128x128xbf16, #tpu.memory_space<vmem>>, vector<128x128xbf16>
    %cst = arith.constant dense<0.000000e+00> : vector<8x128xf32>
    %6 = tpu.matmul %4, %5, %cst {dimension_numbers = #tpu.dot_dimension_numbers<[1], [0], [0], [1], [0, 0, 1, 1], [], []>} : vector<8x128xbf16>, vector<128x128xbf16>, vector<8x128xf32> -> vector<8x128xf32>
    %7 = arith.addf %3, %6 : vector<8x128xf32>
    %c0_6 = arith.constant 0 : index
    %c0_7 = arith.constant 0 : index
    %8 = vector.load %arg11[%c0_6, %c0_7] : memref<8x128xf32, #tpu.memory_space<vmem>>, vector<8x128xf32>
    tpu.vector_store %arg11[%c0_6, %c0_7], %7 {strides = array<i32>} : memref<8x128xf32, #tpu.memory_space<vmem>>, vector<8x128xf32>,
    %c0_i32_8 = arith.constant 0 : i32
    %9 = arith.cmpi eq, %arg0, %c0_i32_8 : i32
    %10 = arith.extui %9 : i1 to i32
    %c0_i32_9 = arith.constant 0 : i32
    %11 = arith.cmpi ne, %10, %c0_i32_9 : i32
    scf.if %11 {
      %c0_10 = arith.constant 0 : index
      %c0_11 = arith.constant 0 : index
      %12 = vector.load %arg11[%c0_10, %c0_11] : memref<8x128xf32, #tpu.memory_space<vmem>>, vector<8x128xf32>
      %c0_12 = arith.constant 0 : index
      %c0_13 = arith.constant 0 : index
      %13 = vector.load %arg3[%c0_12, %c0_13] : memref<1x128xf32, #tpu.memory_space<vmem>>, vector<1x128xf32>
      %14 = vector.broadcast %13 : vector<1x128xf32> to vector<8x128xf32>
      %15 = arith.addf %12, %14 : vector<8x128xf32>
      %16 = arith.negf %15 : vector<8x128xf32>
      %17 = math.exp %16 : vector<8x128xf32>
      %cst_14 = arith.constant 1.000000e+00 : f32
      %18 = vector.broadcast %cst_14 : f32 to vector<8x128xf32>
      %19 = arith.addf %18, %17 : vector<8x128xf32>
      %20 = arith.divf %18, %19 : vector<8x128xf32>
      %21 = arith.mulf %15, %20 : vector<8x128xf32>
      %22 = arith.truncf %21 : vector<8x128xf32> to vector<8x128xbf16>
      %c0_15 = arith.constant 0 : index
      %c0_16 = arith.constant 0 : index
      %23 = vector.load %arg4[%c0_15, %c0_16] : memref<128x128xbf16, #tpu.memory_space<vmem>>, vector<128x128xbf16>
      %cst_17 = arith.constant dense<0.000000e+00> : vector<8x128xf32>
      %24 = tpu.matmul %22, %23, %cst_17 {dimension_numbers = #tpu.dot_dimension_numbers<[1], [0], [0], [1], [0, 0, 1, 1], [], []>} : vector<8x128xbf16>, vector<128x128xbf16>, vector<8x128xf32> -> vector<8x128xf32>
      %c0_18 = arith.constant 0 : index
      %c0_19 = arith.constant 0 : index
      %25 = vector.load %arg5[%c0_18, %c0_19] : memref<1x128xf32, #tpu.memory_space<vmem>>, vector<1x128xf32>
      %26 = vector.broadcast %25 : vector<1x128xf32> to vector<8x128xf32>
      %27 = arith.addf %24, %26 : vector<8x128xf32>
      %28 = arith.negf %27 : vector<8x128xf32>
      %29 = math.exp %28 : vector<8x128xf32>
      %cst_20 = arith.constant 1.000000e+00 : f32
      %30 = vector.broadcast %cst_20 : f32 to vector<8x128xf32>
      %31 = arith.addf %30, %29 : vector<8x128xf32>
      %32 = arith.divf %30, %31 : vector<8x128xf32>
      %33 = arith.mulf %27, %32 : vector<8x128xf32>
      %c0_21 = arith.constant 0 : index
      %c0_22 = arith.constant 0 : index
      %34 = vector.load %arg6[%c0_21, %c0_22] : memref<8x128xbf16, #tpu.memory_space<vmem>>, vector<8x128xbf16>
      %c0_23 = arith.constant 0 : index
      %c0_24 = arith.constant 0 : index
      %35 = vector.load %arg7[%c0_23, %c0_24] : memref<128x128xbf16, #tpu.memory_space<vmem>>, vector<128x128xbf16>
      %cst_25 = arith.constant dense<0.000000e+00> : vector<8x128xf32>
      %36 = tpu.matmul %34, %35, %cst_25 {dimension_numbers = #tpu.dot_dimension_numbers<[1], [0], [0], [1], [0, 0, 1, 1], [], []>} : vector<8x128xbf16>, vector<128x128xbf16>, vector<8x128xf32> -> vector<8x128xf32>
      %c0_26 = arith.constant 0 : index
      %c0_27 = arith.constant 0 : index
      %37 = vector.load %arg8[%c0_26, %c0_27] : memref<1x128xf32, #tpu.memory_space<vmem>>, vector<1x128xf32>
      %38 = vector.broadcast %37 : vector<1x128xf32> to vector<8x128xf32>
      %39 = arith.addf %36, %38 : vector<8x128xf32>
      %40 = arith.negf %39 : vector<8x128xf32>
      %41 = math.exp %40 : vector<8x128xf32>
      %cst_28 = arith.constant 1.000000e+00 : f32
      %42 = vector.broadcast %cst_28 : f32 to vector<8x128xf32>
      %43 = arith.addf %42, %41 : vector<8x128xf32>
      %44 = arith.divf %42, %43 : vector<8x128xf32>
      %45 = arith.mulf %39, %44 : vector<8x128xf32>
      %46 = arith.truncf %33 : vector<8x128xf32> to vector<8x128xbf16>
      %c0_29 = arith.constant 0 : index
      %c0_30 = arith.constant 0 : index
      %47 = vector.load %arg9[%c0_29, %c0_30] : memref<8x128xbf16, #tpu.memory_space<vmem>>, vector<8x128xbf16>
      tpu.vector_store %arg9[%c0_29, %c0_30], %46 {strides = array<i32>} : memref<8x128xbf16, #tpu.memory_space<vmem>>, vector<8x128xbf16>,
      %48 = arith.truncf %45 : vector<8x128xf32> to vector<8x128xbf16>
      %c0_31 = arith.constant 0 : index
      %c0_32 = arith.constant 0 : index
      %49 = vector.load %arg10[%c0_31, %c0_32] : memref<8x128xbf16, #tpu.memory_space<vmem>>, vector<8x128xbf16>
      tpu.vector_store %arg10[%c0_31, %c0_32], %48 {strides = array<i32>} : memref<8x128xbf16, #tpu.memory_space<vmem>>, vector<8x128xbf16>,
    } else {
    }
    return
  }
  func.func @transform_0(%arg0: i32) -> (i32, i32) {
    %c0_i32 = arith.constant 0 : i32
    %c0_i32_0 = arith.constant 0 : i32
    return %c0_i32, %arg0 : i32, i32
  }
  func.func @transform_1(%arg0: i32) -> (i32, i32) {
    %c0_i32 = arith.constant 0 : i32
    %c0_i32_0 = arith.constant 0 : i32
    return %arg0, %c0_i32 : i32, i32
  }
  func.func @transform_2(%arg0: i32) -> (i32, i32) {
    %c0_i32 = arith.constant 0 : i32
    %c0_i32_0 = arith.constant 0 : i32
    %c0_i32_1 = arith.constant 0 : i32
    return %c0_i32, %c0_i32_0 : i32, i32
  }
  func.func @transform_3(%arg0: i32) -> (i32, i32) {
    %c0_i32 = arith.constant 0 : i32
    %c0_i32_0 = arith.constant 0 : i32
    %c0_i32_1 = arith.constant 0 : i32
    return %c0_i32, %c0_i32_0 : i32, i32
  }
  func.func @transform_4(%arg0: i32) -> (i32, i32) {
    %c0_i32 = arith.constant 0 : i32
    %c0_i32_0 = arith.constant 0 : i32
    %c0_i32_1 = arith.constant 0 : i32
    return %c0_i32, %c0_i32_0 : i32, i32
  }
  func.func @transform_5(%arg0: i32) -> (i32, i32) {
    %c0_i32 = arith.constant 0 : i32
    %c0_i32_0 = arith.constant 0 : i32
    %c0_i32_1 = arith.constant 0 : i32
    return %c0_i32, %c0_i32_0 : i32, i32
  }
  func.func @transform_6(%arg0: i32) -> (i32, i32) {
    %c0_i32 = arith.constant 0 : i32
    %c0_i32_0 = arith.constant 0 : i32
    %c0_i32_1 = arith.constant 0 : i32
    return %c0_i32, %c0_i32_0 : i32, i32
  }
  func.func @transform_7(%arg0: i32) -> (i32, i32) {
    %c0_i32 = arith.constant 0 : i32
    %c0_i32_0 = arith.constant 0 : i32
    %c0_i32_1 = arith.constant 0 : i32
    return %c0_i32, %c0_i32_0 : i32, i32
  }
  func.func @transform_8(%arg0: i32) -> (i32, i32) {
    %c0_i32 = arith.constant 0 : i32
    %c0_i32_0 = arith.constant 0 : i32
    %c0_i32_1 = arith.constant 0 : i32
    return %c0_i32, %c0_i32_0 : i32, i32
  }
  func.func @transform_9(%arg0: i32) -> (i32, i32) {
    %c0_i32 = arith.constant 0 : i32
    %c0_i32_0 = arith.constant 0 : i32
    %c0_i32_1 = arith.constant 0 : i32
    return %c0_i32, %c0_i32_0 : i32, i32
  }
}

</mosaic_0001>

<bundles_post_ra>
// kernel: tpu_custom_call.1
= control target key start
LH: loop header
LB: loop body
LE: loop exit
PB: predicated region body
PF: predicated region fallthrough
CT: control target
= control target key end

     0   :  { %15 = vsyncpa [#allocation4], 0  ;;  %s931_s0 = inlined_call_operand.hbm [shape: bf16[8,128], index: 0, kind: input, shape index: {}]   ;;  %s932_s1 = inlined_call_operand.hbm [shape: bf16[128,128], index: 1, kind: input, shape index: {}]   ;;  %s933_s2 = inlined_call_operand.hbm [shape: f32[1,128], index: 2, kind: input, shape index: {}]   ;;  %s934_s3 = inlined_call_operand.hbm [shape: bf16[128,128], index: 3, kind: input, shape index: {}]   ;;  %s935_s4 = inlined_call_operand.hbm [shape: f32[1,128], index: 4, kind: input, shape index: {}]   ;;  %s936_s5 = inlined_call_operand.vmem [shape: bf16[8,128], index: 5, kind: input, shape index: {}]   ;;  %s937_s6 = inlined_call_operand.hbm [shape: bf16[128,128], index: 6, kind: input, shape index: {}]   ;;  %s938_s7 = inlined_call_operand.vmem [shape: f32[1,128], index: 7, kind: input, shape index: {}]   ;;  %s939_s8 = inlined_call_operand.hbm [shape: bf16[8,128], index: 8, kind: output, shape index: {0}]   ;;  %s940_s9 = inlined_call_operand.hbm [shape: bf16[8,128], index: 9, kind: output, shape index: {1}]  }
   0x1   :  { %16 = vsyncpa [#allocation7], 0 }
   0x2   :  { %17 = vsyncpa [#allocation10], 0 }
   0x3   :  { %18 = vsyncpa [#allocation13], 0 }
   0x4   :  { %19 = vsyncpa [#allocation5], 0  ;;  %s36_s11 = sshll.u32 %s932_s1, 4  ;;  %s37_s11 = int_to_ptr.hbm [resolvable:$true] %s36_s11 }
   0x5   :  { %20 = vsyncpa [#allocation16], 0  ;;  %s832_s12 = smov [#allocation6]   ;;  %s60_s16 = sshll.u32 %s934_s3, 4  ;;  %s61_s16 = int_to_ptr.hbm [resolvable:$true] %s60_s16 }
   0x6   :  { %s38_s13 = sshll.u32 %s832_s12, 4  ;;  %s833_s17 = smov 64   ;;  %s39_s13 = int_to_ptr.vmem [resolvable:$true] %s38_s13 }
   0x7   :  { %s834_s18 = smov 4   ;;  %s835_s19 = smov [#allocation9]  }
   0x8   :  { %44 = dma.hbm_to_vmem [thread:$0]  %s37_s11, 1024, %s39_s13, [#allocation7], %s833_s17, %s833_s17, %s834_s18  }
   0x9   :  { %s62_s20 = sshll.u32 %s835_s19, 4  ;;  %s26_s22 = sshll.u32 %s931_s0, 4  ;;  %s63_s20 = int_to_ptr.vmem [resolvable:$true] %s62_s20  ;;  %s27_s22 = int_to_ptr.hbm [resolvable:$true] %s26_s22 }
   0xa   :  { %68 = dma.hbm_to_vmem [thread:$0]  %s61_s16, 1024, %s63_s20, [#allocation10], %s833_s17, %s833_s17, %s834_s18  }
   0xb   :  { %s50_s24 = sshll.u32 %s933_s2, 4  ;;  %s836_s25 = smov [#allocation3]   ;;  %s51_s24 = int_to_ptr.hbm [resolvable:$true] %s50_s24 }
   0xc   :  { %s28_s26 = sshll.u32 %s836_s25, 4  ;;  %s837_s27 = smov [#allocation8]   ;;  %s29_s26 = int_to_ptr.vmem [resolvable:$true] %s28_s26 }
   0xd   :  { %31 = dma.hbm_to_vmem [thread:$0]  %s27_s22, 64, %s29_s26, [#allocation4]  }
   0xe   :  { %s52_s28 = sshll.u32 %s837_s27, 4  ;;  %s74_s0 = sshll.u32 %s935_s4, 4  ;;  %s53_s28 = int_to_ptr.vmem [resolvable:$true] %s52_s28  ;;  %s75_s0 = int_to_ptr.hbm [resolvable:$true] %s74_s0 }
   0xf   :  { %55 = dma.hbm_to_vmem [thread:$0]  %s51_s24, 16, %s53_s28, [#allocation7]  }
  0x10   :  { %s86_s12 = sshll.u32 %s937_s6, 4  ;;  %s838_s13 = smov [#allocation11]   ;;  %s87_s12 = int_to_ptr.hbm [resolvable:$true] %s86_s12 }
  0x11   :  { %s76_s2 = sshll.u32 %s838_s13, 4  ;;  %s839_s14 = smov [#allocation12]   ;;  %s77_s2 = int_to_ptr.vmem [resolvable:$true] %s76_s2 }
  0x12   :  { %79 = dma.hbm_to_vmem [thread:$0]  %s75_s0, 16, %s77_s2, [#allocation10]  }
  0x13   :  { %s88_s15 = sshll.u32 %s839_s14, 4  ;;  %s89_s15 = int_to_ptr.vmem [resolvable:$true] %s88_s15 }
  0x14   :  { %94 = dma.hbm_to_vmem [thread:$0]  %s87_s12, 1024, %s89_s15, [#allocation13], %s833_s17, %s833_s17, %s834_s18  }
  0x15   :  { %820 = dma.done.wait [#allocation4], 64  }
  0x16   :  { %821 = vsyncadd [#allocation4], 4294967232 }
  0x17   :  { %822 = dma.done.wait [#allocation7], 1040  }
  0x18   :  { %823 = vsyncadd [#allocation7], 4294966256 }
  0x19   :  { %824 = dma.done.wait [#allocation10], 1040  }
  0x1a   :  { %825 = vsyncadd [#allocation10], 4294966256 }
  0x1b   :  { %826 = dma.done.wait [#allocation13], 1024  }
  0x1c   :  { %827 = vsyncadd [#allocation13], 4294966272  ;;  %v586_v0 = vld [vmem:[#allocation6 + $0x38] sm:$0xff]  ;;  %v585_v1 = vld [vmem:[#allocation6 + $0x30] sm:$0xff]  ;;  %s462_s20 = sshll.u32 %s940_s9, 4  ;;  %s841_s9 = smov [#allocation14]   ;;  %s463_s20 = int_to_ptr.hbm [resolvable:$true] %s462_s20 }
  0x1d   :  { %192 = vmatpush.bf16.msra.mxu0 %v586_v0  ;;  %v602_v2 = vld [vmem:[#allocation12 + $0x38] sm:$0xff]  ;;  %v601_v3 = vld [vmem:[#allocation12 + $0x30] sm:$0xff]  ;;  %v584_v4 = vld [vmem:[#allocation6 + $0x28] sm:$0xff]  ;;  %s449_s21 = sshll.u32 %s841_s9, 4  ;;  %s451_s3 = sshll.u32 %s939_s8, 4  ;;  %s450_s21 = int_to_ptr.vmem [resolvable:$true] %s449_s21  ;;  %s452_s3 = int_to_ptr.hbm [resolvable:$true] %s451_s3 }
  0x1e   :  { %407 = vmatpush.bf16.msra.mxu2 %v602_v2  ;;  %v600_v5 = vld [vmem:[#allocation12 + $0x28] sm:$0xff]  ;;  %v583_v6 = vld [vmem:[#allocation6 + $0x20] sm:$0xff]  ;;  %v582_v8 = vld [vmem:[#allocation6 + $0x18] sm:$0xff] }
  0x1f   :  { %v599_v7 = vld [vmem:[#allocation12 + $0x20] sm:$0xff]  ;;  %v598_v9 = vld [vmem:[#allocation12 + $0x18] sm:$0xff]  ;;  %v581_v10 = vld [vmem:[#allocation6 + $0x10] sm:$0xff] }
  0x20   :  { %v597_v11 = vld [vmem:[#allocation12 + $0x10] sm:$0xff]  ;;  %v580_v12 = vld [vmem:[#allocation6 + $0x8] sm:$0xff]  ;;  %v579_v14 = vld [vmem:[#allocation6] sm:$0xff] }
  0x21   :  { %193 = vmatpush.bf16.msra.mxu0 %v585_v1  ;;  %v596_v13 = vld [vmem:[#allocation12 + $0x8] sm:$0xff]  ;;  %v595_v15 = vld [vmem:[#allocation12] sm:$0xff]  ;;  %v127_v16 = vld [vmem:[#allocation3] sm:$0xf] }
  0x22   :  { %408 = vmatpush.bf16.msra.mxu2 %v601_v3  ;;  %v338_v17 = vld [vmem:[%s936_s5] sm:$0xf]  ;;  %v593_v19 = vld [vmem:[#allocation9 + $0x30] sm:$0xff]  ;;  %v592_v20 = vld [vmem:[#allocation9 + $0x28] sm:$0xff] }
  0x23   :  { %v594_v18 = vld [vmem:[#allocation9 + $0x38] sm:$0xff]  ;;  %v591_v21 = vld [vmem:[#allocation9 + $0x20] sm:$0xff]  ;;  %v589_v23 = vld [vmem:[#allocation9 + $0x10] sm:$0xff] }
  0x24   :  { %305 = vmatpush.bf16.msra.mxu1 %v594_v18  ;;  %v590_v22 = vld [vmem:[#allocation9 + $0x18] sm:$0xff]  ;;  %v588_v24 = vld [vmem:[#allocation9 + $0x8] sm:$0xff]  ;;  %v587_v25 = vld [vmem:[#allocation9] sm:$0xff] }
  0x25   :  { %194 = vmatpush.bf16.msra.mxu0 %v584_v4  ;;  %v613_v26 = vld [vmem:[#allocation8] ss:$0 sm:$0xff]  ;;  %v614_v45 = vld [vmem:[%s938_s7] ss:$0 sm:$0xff]  ;;  %s840_s7 = smov [#allocation15]  }
  0x26   :  { %409 = vmatpush.bf16.msra.mxu2 %v600_v5  ;;  %s460_s17 = sshll.u32 %s840_s7, 4  ;;  %v615_v0 = vld [vmem:[#allocation11] ss:$0 sm:$0xff]  ;;  %s461_s17 = int_to_ptr.vmem [resolvable:$true] %s460_s17 }
  0x28   :  { %306 = vmatpush.bf16.msra.mxu1 %v593_v19 }
  0x29   :  { %195 = vmatpush.bf16.msra.mxu0 %v583_v6 }
  0x2a   :  { %410 = vmatpush.bf16.msra.mxu2 %v599_v7 }
  0x2c   :  { %307 = vmatpush.bf16.msra.mxu1 %v592_v20 }
  0x2d   :  { %196 = vmatpush.bf16.msra.mxu0 %v582_v8 }
  0x2e   :  { %411 = vmatpush.bf16.msra.mxu2 %v598_v9 }
  0x30   :  { %308 = vmatpush.bf16.msra.mxu1 %v591_v21 }
  0x31   :  { %197 = vmatpush.bf16.msra.mxu0 %v581_v10 }
  0x32   :  { %412 = vmatpush.bf16.msra.mxu2 %v597_v11 }
  0x34   :  { %309 = vmatpush.bf16.msra.mxu1 %v590_v22 }
  0x35   :  { %198 = vmatpush.bf16.msra.mxu0 %v580_v12 }
  0x36   :  { %413 = vmatpush.bf16.msra.mxu2 %v596_v13 }
  0x38   :  { %310 = vmatpush.bf16.msra.mxu1 %v589_v23 }
  0x39   :  { %199 = vmatpush.bf16.msra.mxu0 %v579_v14 }
  0x3a   :  { %414 = vmatpush.bf16.msra.mxu2 %v595_v15 }
  0x3c   :  { %200 = vmatmul.bf16.vlgmr.msra.gmra.mxu0 %v127_v16  ;;  %311 = vmatpush.bf16.msra.mxu1 %v588_v24 }
  0x3d   :  { %415 = vmatmul.bf16.vlgmr.msra.gmra.mxu2 %v338_v17 }
  0x40   :  { %312 = vmatpush.bf16.msra.mxu1 %v587_v25 }
  0xb9   :  { %v201_v27 = vpop.f32.mrf.mxu0 }
  0xba   :  { %v215_v28 = vadd.f32 %v613_v26, %v201_v27 }
  0xbc   :  { %v512_v29 = vmul.f32 -1.442695, %v215_v28 }
  0xbe   :  { %616 = vpow2.f32 %v512_v29 }
  0xc0   :  { %v416_v46 = vpop.f32.mrf.mxu2 }
  0xc1   :  { %v203_v30 = vpop.f32.mrf.mxu0  ;;  %v417_v47 = vadd.f32 %v614_v45, %v416_v46 }
  0xc3   :  { %v578_v48 = vmul.f32 -1.442695, %v417_v47 }
  0xc4   :  { %v617_v31 = vpop.eup %616 }
  0xc5   :  { %v219_v32 = vadd.f32 1.0, %v617_v31 }
  0xc7   :  { %618 = vrcp.f32 %v219_v32  ;;  %v231_v36 = vand.u32 2147483648, %v219_v32  ;;  %v229_v38 = vand.u32 2147483647, %v219_v32  ;;  %vm225_vm1 = vweird.f32 %v219_v32 }
  0xc8   :  { %620 = vpow2.f32 %v578_v48  ;;  %v418_v49 = vpop.f32.mrf.mxu2 }
  0xc9   :  { %v232_v40 = vor.u32 1.1754944e-38, %v231_v36  ;;  %vm230_vm3 = vcmp.eq.f32.partialorder %v229_v38, 8.507059e+37 }
  0xcd   :  { %v619_v33 = vpop.eup %618 }
  0xce   :  { %v221_v34 = vmul.f32 %v619_v33, %v219_v32  ;;  %vm226_vm0 = vweird.f32 %v619_v33  ;;  %v621_v50 = vpop.eup %620 }
  0xcf   :  { %vm227_vm2 = vmor %vm225_vm1, %vm226_vm0  ;;  %v423_v51 = vadd.f32 1.0, %v621_v50 }
  0xd0   :  { %v222_v35 = vsub.f32 1.0, %v221_v34 }
  0xd1   :  { %622 = vrcp.f32 %v423_v51  ;;  %v435_v54 = vand.u32 2147483648, %v423_v51  ;;  %vm429_vm4 = vweird.f32 %v423_v51  ;;  %v433_v56 = vand.u32 2147483647, %v423_v51 }
  0xd2   :  { %v223_v37 = vmul.f32 %v619_v33, %v222_v35 }
  0xd3   :  { %v436_v58 = vor.u32 1.1754944e-38, %v435_v54  ;;  %vm434_vm7 = vcmp.eq.f32.partialorder %v433_v56, 8.507059e+37 }
  0xd4   :  { %v224_v39 = vadd.f32 %v619_v33, %v223_v37 }
  0xd6   :  { %v228_v41 = vsel %vm227_vm2, %v619_v33, %v224_v39 }
  0xd7   :  { %v233_v42 = vsel %vm230_vm3, %v232_v40, %v228_v41  ;;  %v623_v52 = vpop.eup %622 }
  0xd8   :  { %v235_v43 = vmul.f32 %v233_v42, %v215_v28  ;;  %v425_v53 = vmul.f32 %v623_v52, %v423_v51  ;;  %vm430_vm5 = vweird.f32 %v623_v52 }
  0xd9   :  { %vm431_vm6 = vmor %vm429_vm4, %vm430_vm5 }
  0xda   :  { %v236_v44 = vpack.c.bf16 %v235_v43, %v235_v43  ;;  %v426_v55 = vsub.f32 1.0, %v425_v53 }
  0xdc   :  { %313 = vmatmul.bf16.vlgmr.msra.gmra.mxu1 %v236_v44  ;;  %v427_v57 = vmul.f32 %v623_v52, %v426_v55 }
  0xde   :  { %v428_v59 = vadd.f32 %v623_v52, %v427_v57 }
  0xe0   :  { %v432_v60 = vsel %vm431_vm6, %v623_v52, %v428_v59 }
  0xe1   :  { %v437_v61 = vsel %vm434_vm7, %v436_v58, %v432_v60 }
  0xe2   :  { %v439_v62 = vmul.f32 %v437_v61, %v417_v47 }
  0xe4   :  { %v442_v63 = vpack.c.bf16 %v439_v62, %v439_v62 }
  0xe6   :  { %443 = vst [vmem:[#allocation15] sm:$0xf] %v442_v63 }
  0xe7   :  { %465 = dma.vmem_to_hbm [thread:$0]  %s461_s17, 64, %s463_s20, [#allocation16]  }
 0x159   :  { %v314_v1 = vpop.f32.mrf.mxu1 }
 0x15a   :  { %v315_v2 = vadd.f32 %v615_v0, %v314_v1 }
 0x15c   :  { %v545_v3 = vmul.f32 -1.442695, %v315_v2 }
 0x15e   :  { %624 = vpow2.f32 %v545_v3 }
 0x161   :  { %v316_v4 = vpop.f32.mrf.mxu1 }
 0x164   :  { %v625_v5 = vpop.eup %624 }
 0x165   :  { %v321_v6 = vadd.f32 1.0, %v625_v5 }
 0x167   :  { %626 = vrcp.f32 %v321_v6  ;;  %v333_v10 = vand.u32 2147483648, %v321_v6  ;;  %v331_v12 = vand.u32 2147483647, %v321_v6  ;;  %vm327_vm9 = vweird.f32 %v321_v6 }
 0x169   :  { %v334_v14 = vor.u32 1.1754944e-38, %v333_v10  ;;  %vm332_vm11 = vcmp.eq.f32.partialorder %v331_v12, 8.507059e+37 }
 0x16d   :  { %v627_v7 = vpop.eup %626 }
 0x16e   :  { %v323_v8 = vmul.f32 %v627_v7, %v321_v6  ;;  %vm328_vm8 = vweird.f32 %v627_v7 }
 0x16f   :  { %vm329_vm10 = vmor %vm327_vm9, %vm328_vm8 }
 0x170   :  { %v324_v9 = vsub.f32 1.0, %v323_v8 }
 0x172   :  { %v325_v11 = vmul.f32 %v627_v7, %v324_v9 }
 0x174   :  { %v326_v13 = vadd.f32 %v627_v7, %v325_v11 }
 0x176   :  { %v330_v15 = vsel %vm329_vm10, %v627_v7, %v326_v13 }
 0x177   :  { %v335_v16 = vsel %vm332_vm11, %v334_v14, %v330_v15 }
 0x178   :  { %v337_v17 = vmul.f32 %v335_v16, %v315_v2 }
 0x17a   :  { %v440_v18 = vpack.c.bf16 %v337_v17, %v337_v17 }
 0x17c   :  { %441 = vst [vmem:[#allocation14] sm:$0xf] %v440_v18 }
 0x17d   :  { %454 = dma.vmem_to_hbm [thread:$0]  %s450_s21, 64, %s452_s3, [#allocation5]  }
 0x17e   :  { %828 = dma.done.wait [#allocation5], 64  }
 0x17f   :  { %829 = vsyncadd [#allocation5], 4294967232 }
 0x180   :  { %830 = dma.done.wait [#allocation16], 64  }
 0x181   :  { %831 = vsyncadd [#allocation16], 4294967232 }
 0x182   :  { %474 = vsyncpa [#allocation4], 1 }
 0x183   :  { %475 = vsyncpa [#allocation7], 1 }
 0x184   :  { %476 = vsyncpa [#allocation10], 1 }
 0x185   :  { %477 = vsyncpa [#allocation13], 1 }
 0x186   :  { %478 = vsyncpa [#allocation5], 1 }
 0x187   :  { %479 = vsyncpa [#allocation16], 1 }

</bundles_post_ra>
